<compile_context>
chip_gen: v7x
topology: tpu7x:2x2x1
jax: 0.10.0
libtpu: 0.0.40
codegen_flags: <defaults>
</compile_context>

<pallas_src>
import functools
import math

import numpy as np

import jax
import jax.numpy as jnp
from jax.experimental import pallas as pl
from jax.experimental.pallas import tpu as pltpu


# ----------------------------------------------------------------------------
# Hardware / tiling helpers.
# ----------------------------------------------------------------------------
def _tpu_vmem_and_cores():
    """(physical VMEM bytes, #TensorCores) with safe fallbacks."""
    vmem_cap = 128 * 2 ** 20
    cores = 1
    try:
        get_info = getattr(pltpu, "get_tpu_info", None)
        if get_info is not None:
            info = get_info()
            cap = getattr(info, "vmem_capacity_bytes", None)
            if cap:
                vmem_cap = int(cap)
            for attr in ("num_tensorcores", "tensorcores_per_chip",
                         "num_cores", "core_count"):
                val = getattr(info, attr, None)
                if val:
                    cores = int(val)
                    break
    except Exception:
        pass
    return vmem_cap, cores


def _pick_seq_tile(L, max_tile=512):
    """Largest divisor of L that is <= max_tile (prefer 256/128/8 alignment)."""
    if L <= max_tile:
        return L
    for align in (256, 128, 8):
        t = (max_tile // align) * align
        while t >= align:
            if L % t == 0:
                return t
            t -= align
    return L


def _pick_row_tile(M, max_tile=512):
    """Row tile for the linear kernel: divisor of M, multiple of 8, <= max_tile."""
    if M <= max_tile:
        return M
    t = (max_tile // 8) * 8
    while t >= 8:
        if M % t == 0:
            return t
        t -= 8
    return M


def _pick_block_b(B_div, Lq_t, Lk, Dk, Dv, *, in_itemsize, out_itemsize,
                  has_mask, return_attn, budget_bytes, num_cores):
    """Largest divisor of B_div whose per-step VMEM footprint fits the budget."""

    def per_step(bt):
        p = bt * (Lq_t * Dk + Lk * Dk + Lk * Dv) * in_itemsize
        p += bt * Lq_t * Dv * out_itemsize
        if return_attn:
            p += bt * Lq_t * Lk * out_itemsize
        if has_mask:
            p += bt * Lq_t * Lk  # int8 mask
        p *= 2  # pipeline double-buffering
        p += bt * Lq_t * (2 * Lk + Dv) * 4  # f32 intermediates (logits/e/acc)
        return p

    divisors = [d for d in range(1, B_div + 1) if B_div % d == 0]
    fitting = [d for d in divisors if per_step(d) <= budget_bytes] or [1]
    best = max(fitting)
    # Even-grid heuristic only when multiple TensorCores can split the axis.
    if num_cores >= 2:
        for d in sorted(fitting, reverse=True):
            if (B_div // d) % num_cores == 0 and per_step(d) >= (1 << 20):
                return d
    return best


# ----------------------------------------------------------------------------
# Scaled dot-product attention kernel (the core of the module).
# ----------------------------------------------------------------------------
def _sdpa_kernel(*refs, inv_scale_temp, has_mask, return_attn):
    """One grid step = one (head, batch-tile, q-tile) block.

    q: (Bt, Lq_t, Dk), k: (Bt, Lk, Dk), v: (Bt, Lk, Dv)
    mask (optional, int8): (Bt, Lq_t, Lk), nonzero => masked out
    attn (optional): (Bt, Lq_t, Lk), out: (Bt, Lq_t, Dv)
    """
    q_ref, k_ref, v_ref = refs[:3]
    i = 3
    mask_ref = None
    if has_mask:
        mask_ref = refs[i]
        i += 1
    attn_ref = None
    if return_attn:
        attn_ref = refs[i]
        i += 1
    out_ref = refs[i]

    # Fold 1/(scale*temperature) into Q: Bt*Lq*Dk multiplies instead of
    # Bt*Lq*Lk on the score tile.  MXU fed in the operands' native dtype,
    # f32 accumulation via preferred_element_type.
    q = q_ref[...] * inv_scale_temp
    k = k_ref[...]
    v = v_ref[...]

    logits = jnp.einsum("bqd,bkd->bqk", q, k, preferred_element_type=jnp.float32)

    if has_mask:
        # masked_fill(mask, -inf).  Rows where *every* key is masked produce
        # NaN, exactly like torch masked_fill + softmax.
        logits = jnp.where(mask_ref[...] != 0, -jnp.inf, logits)

    # Softmax over the key axis (f32 math; exp + reciprocal on the EUP).
    m = jnp.max(logits, axis=-1, keepdims=True)
    e = jnp.exp(logits - m)
    denom = jnp.sum(e, axis=-1, keepdims=True)
    attn = e * pl.reciprocal(denom, approx=True)

    if return_attn:
        attn_ref[...] = attn.astype(attn_ref.dtype)

    out = jnp.einsum("bqk,bkd->bqd", attn.astype(v.dtype), v,
                     preferred_element_type=jnp.float32)
    out_ref[...] = out.astype(out_ref.dtype)


def _make_mask_map(mask_blocks):
    def mask_map(h, b, qi):
        return (b % mask_blocks, qi, 0)
    return mask_map


def _make_attn_map(n_b_blocks):
    def attn_map(h, b, qi):
        return (h * n_b_blocks + b, qi, 0)
    return attn_map


def _attention_call(q, k, v, mask, *, scale, temperature, n_head, return_attn,
                    block_b=None, block_q=None):
    """Fused multi-head SDPA.

    q: (B, Lq, n_head*Dk), k: (B, Lk, n_head*Dk), v: (B, Lk, n_head*Dv)
    mask: (B, Lq, Lk) or (B', Lq, Lk) with B' | B (broadcast), or None.
    Returns (attn (n_head*B, Lq, Lk), out (B, Lq, n_head*Dv)) or just out.
    """
    B, Lq, HDk = q.shape
    Bk, Lk, HDk2 = k.shape
    Bv, Lkv, HDv = v.shape
    assert (Bk, HDk2) == (B, HDk) and (Bv, Lkv) == (B, Lk)
    assert HDk % n_head == 0 and HDv % n_head == 0
    Dk, Dv = HDk // n_head, HDv // n_head
    if n_head > 1:
        # Last-dim head slicing must be lane aligned; callers fall back to a
        # head-major relayout otherwise (see multi_head_sdpa).
        assert Dk % 128 == 0 and Dv % 128 == 0

    out_dtype = q.dtype
    attn_dtype = q.dtype  # matches input dtype; halves writeback for bf16

    has_mask = mask is not None
    mask_B = B
    if has_mask:
        mask = mask.astype(jnp.int8)  # 4x less HBM/DMA traffic than int32
        mask_B = mask.shape[0]
        assert mask.shape[1:] == (Lq, Lk) and B % mask_B == 0

    vmem_cap, num_cores = _tpu_vmem_and_cores()
    budget = min(48 * 2 ** 20, vmem_cap // 3)

    Lq_t = _pick_seq_tile(Lq) if block_q is None else int(block_q)
    assert Lq % Lq_t == 0

    if block_b is None:
        Bt = _pick_block_b(
            mask_B if has_mask else B, Lq_t, Lk, Dk, Dv,
            in_itemsize=q.dtype.itemsize,
            out_itemsize=jnp.dtype(out_dtype).itemsize,
            has_mask=has_mask, return_attn=return_attn,
            budget_bytes=budget, num_cores=num_cores)
    else:
        Bt = int(block_b)
    assert B % Bt == 0
    assert (not has_mask) or (mask_B % Bt == 0)

    nbb = B // Bt
    grid = (n_head, nbb, Lq // Lq_t)  # qi innermost -> K/V not re-fetched per q tile

    in_specs = [
        pl.BlockSpec((Bt, Lq_t, Dk), lambda h, b, qi: (b, qi, h)),
        pl.BlockSpec((Bt, Lk, Dk), lambda h, b, qi: (b, 0, h)),
        pl.BlockSpec((Bt, Lk, Dv), lambda h, b, qi: (b, 0, h)),
    ]
    args = [q, k, v]
    if has_mask:
        in_specs.append(pl.BlockSpec((Bt, Lq_t, Lk), _make_mask_map(mask_B // Bt)))
        args.append(mask)

    out_spec = pl.BlockSpec((Bt, Lq_t, Dv), lambda h, b, qi: (b, qi, h))
    out_sds = jax.ShapeDtypeStruct((B, Lq, HDv), out_dtype)
    if return_attn:
        attn_spec = pl.BlockSpec((Bt, Lq_t, Lk), _make_attn_map(nbb))
        attn_sds = jax.ShapeDtypeStruct((n_head * B, Lq, Lk), attn_dtype)
        out_specs = [attn_spec, out_spec]
        out_shape = (attn_sds, out_sds)
    else:
        out_specs = out_spec
        out_shape = out_sds

    # Scoped-VMEM limit sized from the actual (double-buffered) blocks plus
    # f32 intermediates, capped at 7/8 of physical VMEM (v7x headroom).
    blk = 2 * (Bt * (Lq_t * Dk + Lk * (Dk + Dv)) * q.dtype.itemsize
               + (Bt * Lq_t * Lk if has_mask else 0)
               + (Bt * Lq_t * Lk * jnp.dtype(attn_dtype).itemsize if return_attn else 0)
               + Bt * Lq_t * Dv * jnp.dtype(out_dtype).itemsize)
    blk += Bt * Lq_t * (2 * Lk + Dv) * 4
    vmem_limit = int(min((vmem_cap * 7) // 8, max(32 * 2 ** 20, blk + 8 * 2 ** 20)))

    kernel = functools.partial(
        _sdpa_kernel,
        inv_scale_temp=float(1.0 / (float(scale) * float(temperature))),
        has_mask=has_mask,
        return_attn=return_attn)

    res = pl.pallas_call(
        kernel,
        out_shape=out_shape,
        grid_spec=pltpu.PrefetchScalarGridSpec(
            num_scalar_prefetch=0,
            grid=grid,
            in_specs=in_specs,
            out_specs=out_specs,
        ),
        compiler_params=pltpu.CompilerParams(
            dimension_semantics=("parallel", "parallel", "parallel"),
            vmem_limit_bytes=vmem_limit,
        ),
    )(*args)

    if return_attn:
        attn, out = res
        return attn, out
    return res


def scaled_dot_product_attention(q, k, v, mask=None, *, scale, temperature=1e-14,
                                 return_attn=True, block_b=None, block_q=None):
    """Pallas port of ScaledDotProductAttention.forward.

    q: (B, Lq, Dk), k: (B, Lk, Dk), v: (B, Lk, Dv).
    mask may have leading dim B' with B' | B (shared across head groups).
    Returns (attn, output) (or just output if return_attn=False).
    """
    return _attention_call(q, k, v, mask, scale=scale, temperature=temperature,
                           n_head=1, return_attn=return_attn,
                           block_b=block_b, block_q=block_q)


def _split_heads(x, n_head, d):
    B, L, _ = x.shape
    return jnp.transpose(x.reshape(B, L, n_head, d), (2, 0, 1, 3)).reshape(n_head * B, L, d)


def multi_head_sdpa(q, k, v, *, n_head, scale, mask=None, temperature=1e-14,
                    return_attn=True):
    """q,k,v: (batch, n, n_head*d) packed head-major along the last dim.

    Returns attn (n_head*batch, n_q, n_k) and out (batch, n_q, n_head*d_v)
    already in the torch merged layout (no transposes needed afterwards).
    """
    B, Lq, HDk = q.shape
    _, Lk, HDv = v.shape
    d_k = HDk // n_head
    d_v = HDv // n_head

    fused = (n_head == 1) or (d_k % 128 == 0 and d_v % 128 == 0)
    if fused:
        return _attention_call(q, k, v, mask, scale=scale, temperature=temperature,
                               n_head=n_head, return_attn=return_attn)

    # Fallback: head dims not 128-aligned -> head-major relayout (extra HBM
    # passes) and a head-shared mask via the modulo index_map.
    qh = _split_heads(q, n_head, d_k)
    kh = _split_heads(k, n_head, d_k)
    vh = _split_heads(v, n_head, d_v)
    res = _attention_call(qh, kh, vh, mask, scale=scale, temperature=temperature,
                          n_head=1, return_attn=return_attn)
    if return_attn:
        attn, out = res
    else:
        attn, out = None, res
    out = jnp.transpose(out.reshape(n_head, B, Lq, d_v), (1, 2, 0, 3)).reshape(
        B, Lq, n_head * d_v)
    return (attn, out) if return_attn else out


# ----------------------------------------------------------------------------
# Row-tiled linear kernel (bias / no-bias specializations).
# ----------------------------------------------------------------------------
def _linear_bias_kernel(x_ref, w_ref, b_ref, o_ref):
    acc = jnp.dot(x_ref[...], w_ref[...], preferred_element_type=jnp.float32)
    o_ref[...] = (acc + b_ref[...].astype(jnp.float32)).astype(o_ref.dtype)


def _linear_nobias_kernel(x_ref, w_ref, o_ref):
    acc = jnp.dot(x_ref[...], w_ref[...], preferred_element_type=jnp.float32)
    o_ref[...] = acc.astype(o_ref.dtype)


def linear(x, w, b=None, *, block_m=None):
    """y = x @ w (+ b) for 2-D x (M, Din), w (Din, Dout), tiled over M."""
    M, Din = x.shape
    Din2, Dout = w.shape
    assert Din2 == Din
    Mt = _pick_row_tile(M) if block_m is None else int(block_m)
    assert M % Mt == 0
    grid = (M // Mt,)

    in_specs = [pl.BlockSpec((Mt, Din), lambda i: (i, 0)),
                pl.BlockSpec((Din, Dout), lambda i: (0, 0))]
    args = [x, w.astype(x.dtype)]
    if b is not None:
        in_specs.append(pl.BlockSpec((1, Dout), lambda i: (0, 0)))
        args.append(b.reshape(1, Dout).astype(x.dtype))
        kern = _linear_bias_kernel
    else:
        kern = _linear_nobias_kernel

    return pl.pallas_call(
        kern,
        out_shape=jax.ShapeDtypeStruct((M, Dout), x.dtype),
        grid_spec=pltpu.PrefetchScalarGridSpec(
            num_scalar_prefetch=0,
            grid=grid,
            in_specs=in_specs,
            out_specs=pl.BlockSpec((Mt, Dout), lambda i: (i, 0)),
        ),
        compiler_params=pltpu.CompilerParams(
            dimension_semantics=("parallel",)),
    )(*args)


# ----------------------------------------------------------------------------
# Module-level forward passes (MultiHeadAttention + SelfAttention).
# ----------------------------------------------------------------------------
def init_self_attention_params(key, n_head, d_k, d_v, d_x, d_o, dtype=jnp.float32):
    def uniform(k, shape, fan):
        stdv = 1.0 / math.sqrt(fan)
        return jax.random.uniform(k, shape, dtype=dtype, minval=-stdv, maxval=stdv)

    ks = jax.random.split(key, 11)
    return {
        # SelfAttention projections (no bias), stored (in, out)
        "wq": uniform(ks[0], (d_x, d_k), d_k),
        "wk": uniform(ks[1], (d_x, d_k), d_k),
        "wv": uniform(ks[2], (d_x, d_v), d_v),
        # MultiHeadAttention linears, weights stored (in, out)
        "fc_q_w": uniform(ks[3], (d_k, n_head * d_k), d_k),
        "fc_q_b": uniform(ks[4], (n_head * d_k,), n_head * d_k),
        "fc_k_w": uniform(ks[5], (d_k, n_head * d_k), d_k),
        "fc_k_b": uniform(ks[6], (n_head * d_k,), n_head * d_k),
        "fc_v_w": uniform(ks[7], (d_v, n_head * d_v), d_v),
        "fc_v_b": uniform(ks[8], (n_head * d_v,), n_head * d_v),
        "fc_o_w": uniform(ks[9], (n_head * d_v, d_o), n_head * d_v),
        "fc_o_b": uniform(ks[10], (d_o,), d_o),
    }


def multi_head_attention_forward(params, q, k, v, n_head, d_k, d_v, mask=None):
    batch, n_q, _ = q.shape
    _, n_k, _ = k.shape
    _, n_v, _ = v.shape

    q = linear(q.reshape(batch * n_q, -1), params["fc_q_w"], params["fc_q_b"])
    k = linear(k.reshape(batch * n_k, -1), params["fc_k_w"], params["fc_k_b"])
    v = linear(v.reshape(batch * n_v, -1), params["fc_v_w"], params["fc_v_b"])

    q = q.reshape(batch, n_q, n_head * d_k)
    k = k.reshape(batch, n_k, n_head * d_k)
    v = v.reshape(batch, n_v, n_head * d_v)

    # Heads are sliced inside the kernel grid (no transpose, no mask tiling);
    # output comes back already merged as (batch, n_q, n_head*d_v).
    attn, output = multi_head_sdpa(q, k, v, n_head=n_head, scale=d_k ** 0.5,
                                   mask=mask, return_attn=True)

    output = linear(output.reshape(batch * n_q, -1), params["fc_o_w"], params["fc_o_b"])
    return attn, output.reshape(batch, n_q, -1)


def self_attention_forward(params, x, n_head, d_k, d_v, mask=None):
    batch, seq, d_x = x.shape
    # Fused QKV projection: one matmul / one kernel launch instead of three.
    w_qkv = jnp.concatenate([params["wq"], params["wk"], params["wv"]], axis=1)
    qkv = linear(x.reshape(batch * seq, d_x), w_qkv)  # no bias (spec has none)
    q = qkv[:, :d_k].reshape(batch, seq, d_k)
    k = qkv[:, d_k:2 * d_k].reshape(batch, seq, d_k)
    v = qkv[:, 2 * d_k:].reshape(batch, seq, d_v)
    return multi_head_attention_forward(params, q, k, v, n_head, d_k, d_v, mask=mask)


# ----------------------------------------------------------------------------
# Float64 NumPy reference for the SDPA core (same math as the torch module).
# ----------------------------------------------------------------------------
def _sdpa_reference_np(q, k, v, mask=None, *, scale, temperature=1e-14):
    q = np.asarray(q, dtype=np.float64)
    k = np.asarray(k, dtype=np.float64)
    v = np.asarray(v, dtype=np.float64)
    u = np.einsum("bqd,bkd->bqk", q, k) / scale
    if mask is not None:
        u = np.where(np.asarray(mask) != 0, -np.inf, u)
    logits = u / temperature
    logits = logits - np.max(logits, axis=-1, keepdims=True)
    e = np.exp(logits)
    attn = e / np.sum(e, axis=-1, keepdims=True)
    out = np.einsum("bqk,bkd->bqd", attn, v)
    return attn, out


if __name__ == "__main__":
    key = jax.random.PRNGKey(0)
    (k_param, k_param2, k_x, k_x2, k_qn, k_v,
     k_lx, k_lw, k_lb) = jax.random.split(key, 9)

    # --- 1) Direct SDPA kernel vs float64 NumPy reference. ------------------
    # With temperature=1e-14 the softmax is an argmax, so the test data is
    # built with score gaps >= 1: k rows are one-hot basis vectors, the first
    # Lk features of q hold an explicit score pattern, the rest are random.
    B, Lq, Lk, Dk, Dv = 4, 8, 8, 32, 32
    scale = Dk ** 0.5

    k_in = jnp.tile(jnp.eye(Lk, Dk, dtype=jnp.float32)[None, :, :], (B, 1, 1))
    b_idx = jnp.arange(B)[:, None, None]
    i_idx = jnp.arange(Lq)[None, :, None]
    j_idx = jnp.arange(Lk)[None, None, :]
    scores = -(((j_idx - (i_idx + b_idx)) % Lk).astype(jnp.float32))  # max 0 at (i+b)%Lk
    q_noise = jax.random.normal(k_qn, (B, Lq, Dk - Lk), dtype=jnp.float32)
    q_in = jnp.concatenate([scores, q_noise], axis=-1)
    v_in = jax.random.normal(k_v, (B, Lk, Dv), dtype=jnp.float32)

    # Masked, full-batch mask (last two keys masked; no fully-masked rows).
    mask_full = jnp.zeros((B, Lq, Lk), dtype=jnp.int8).at[:, :, Lk - 2:].set(1)
    attn_p, out_p = scaled_dot_product_attention(q_in, k_in, v_in, mask=mask_full, scale=scale)
    jax.block_until_ready((attn_p, out_p))
    attn_r, out_r = _sdpa_reference_np(q_in, k_in, v_in, mask_full, scale=scale)
    assert attn_p.shape == (B, Lq, Lk) and out_p.shape == (B, Lq, Dv)
    assert np.allclose(np.asarray(attn_p), attn_r, atol=5e-3, rtol=5e-3)
    assert np.allclose(np.asarray(out_p), out_r, atol=5e-3, rtol=5e-3)

    # Masked, head-shared mask (batch 2 broadcast over B=4 via modulo index_map).
    mask_shared = (jnp.zeros((2, Lq, Lk), dtype=jnp.int8)
                   .at[0, :, :2].set(1).at[1, :, Lk - 2:].set(1))
    attn_s, out_s = scaled_dot_product_attention(q_in, k_in, v_in, mask=mask_shared, scale=scale)
    jax.block_until_ready((attn_s, out_s))
    attn_sr, out_sr = _sdpa_reference_np(
        q_in, k_in, v_in, np.tile(np.asarray(mask_shared), (2, 1, 1)), scale=scale)
    assert np.allclose(np.asarray(attn_s), attn_sr, atol=5e-3, rtol=5e-3)
    assert np.allclose(np.asarray(out_s), out_sr, atol=5e-3, rtol=5e-3)

    # Unmasked path (no mask operand / no mask DMA at all).
    attn_nm, out_nm = scaled_dot_product_attention(q_in, k_in, v_in, mask=None, scale=scale)
    jax.block_until_ready((attn_nm, out_nm))
    attn_nr, out_nr = _sdpa_reference_np(q_in, k_in, v_in, None, scale=scale)
    assert np.allclose(np.asarray(attn_nm), attn_nr, atol=5e-3, rtol=5e-3)
    assert np.allclose(np.asarray(out_nm), out_nr, atol=5e-3, rtol=5e-3)

    # Output-only specialization (attn writeback dropped).
    out_only = scaled_dot_product_attention(q_in, k_in, v_in, mask=None, scale=scale,
                                            return_attn=False)
    jax.block_until_ready(out_only)
    assert out_only.shape == (B, Lq, Dv)
    assert np.allclose(np.asarray(out_only), out_nr, atol=5e-3, rtol=5e-3)

    # --- 2) Row-tiled linear kernel (bias path) vs NumPy. --------------------
    xw = jax.random.normal(k_lx, (16, 32), dtype=jnp.float32)
    ww = jax.random.normal(k_lw, (32, 48), dtype=jnp.float32) * 0.1
    bb = jax.random.normal(k_lb, (48,), dtype=jnp.float32) * 0.1
    y = linear(xw, ww, bb)
    jax.block_until_ready(y)
    y_ref = np.asarray(xw, np.float64) @ np.asarray(ww, np.float64) + np.asarray(bb, np.float64)
    assert np.allclose(np.asarray(y), y_ref, atol=2e-2, rtol=2e-2)

    # --- 3) Full SelfAttention forward, fused-head path (128-aligned heads). -
    n_head, d_k, d_v, d_x, d_o = 2, 128, 128, 32, 32
    batch, seq = 2, 8
    params = init_self_attention_params(k_param, n_head, d_k, d_v, d_x, d_o)
    x = jax.random.normal(k_x, (batch, seq, d_x), dtype=jnp.float32)
    attn_full, out_full = self_attention_forward(params, x, n_head, d_k, d_v, mask=None)
    jax.block_until_ready((attn_full, out_full))
    assert attn_full.shape == (n_head * batch, seq, seq)
    assert out_full.shape == (batch, seq, d_o)
    assert bool(np.all(np.isfinite(np.asarray(attn_full))))
    assert bool(np.all(np.isfinite(np.asarray(out_full))))

    # --- 4) Full forward, fallback path (non-128-aligned head dims). ---------
    n_head2, d_k2, d_v2, d_x2, d_o2 = 2, 32, 32, 32, 32
    params2 = init_self_attention_params(k_param2, n_head2, d_k2, d_v2, d_x2, d_o2)
    x2 = jax.random.normal(k_x2, (batch, seq, d_x2), dtype=jnp.float32)
    attn2, out2 = self_attention_forward(params2, x2, n_head2, d_k2, d_v2, mask=None)
    jax.block_until_ready((attn2, out2))
    assert attn2.shape == (n_head2 * batch, seq, seq)
    assert out2.shape == (batch, seq, d_o2)
    assert bool(np.all(np.isfinite(np.asarray(out2))))

    print("KERNEL_OK")
</pallas_src>

<mosaic_0001>
module attributes {stable_mosaic.version = 11 : i64} {
  func.func @_sdpa_kernel(%arg0: i32, %arg1: i32, %arg2: i32, %arg3: memref<4x8x32xf32, #tpu.memory_space<vmem>>, %arg4: memref<4x8x32xf32, #tpu.memory_space<vmem>>, %arg5: memref<4x8x32xf32, #tpu.memory_space<vmem>>, %arg6: memref<4x8x8xi8, #tpu.memory_space<vmem>>, %arg7: memref<4x8x8xf32, #tpu.memory_space<vmem>>, %arg8: memref<4x8x32xf32, #tpu.memory_space<vmem>>) attributes {dimension_semantics = [#tpu.dimension_semantics<parallel>, #tpu.dimension_semantics<parallel>, #tpu.dimension_semantics<parallel>], iteration_bounds = array<i64: 1, 1, 1>, scalar_prefetch = 0 : i64, scratch_operands = 0 : i64, tpu.core_type = #tpu.core_type<tc>, window_params = [{transform_indices = @transform_0, window_bounds = array<i64: 4, 8, 32>}, {transform_indices = @transform_1, window_bounds = array<i64: 4, 8, 32>}, {transform_indices = @transform_2, window_bounds = array<i64: 4, 8, 32>}, {transform_indices = @transform_3, window_bounds = array<i64: 4, 8, 8>}, {transform_indices = @transform_4, window_bounds = array<i64: 4, 8, 8>}, {transform_indices = @transform_5, window_bounds = array<i64: 4, 8, 32>}]} {
    %c0 = arith.constant 0 : index
    %c0_0 = arith.constant 0 : index
    %c0_1 = arith.constant 0 : index
    %0 = vector.load %arg3[%c0, %c0_0, %c0_1] : memref<4x8x32xf32, #tpu.memory_space<vmem>>, vector<4x8x32xf32>
    %cst = arith.constant 1.76776702E+13 : f32
    %1 = vector.broadcast %cst : f32 to vector<4x8x32xf32>
    %2 = arith.mulf %0, %1 : vector<4x8x32xf32>
    %c0_2 = arith.constant 0 : index
    %c0_3 = arith.constant 0 : index
    %c0_4 = arith.constant 0 : index
    %3 = vector.load %arg4[%c0_2, %c0_3, %c0_4] : memref<4x8x32xf32, #tpu.memory_space<vmem>>, vector<4x8x32xf32>
    %c0_5 = arith.constant 0 : index
    %c0_6 = arith.constant 0 : index
    %c0_7 = arith.constant 0 : index
    %4 = vector.load %arg5[%c0_5, %c0_6, %c0_7] : memref<4x8x32xf32, #tpu.memory_space<vmem>>, vector<4x8x32xf32>
    "tpu.trace_start"() <{level = 10 : i32, message = "bqd,bkd->bqk"}> : () -> ()
    %cst_8 = arith.constant dense<0.000000e+00> : vector<4x8x8xf32>
    %5 = tpu.matmul %2, %3, %cst_8 {dimension_numbers = #tpu.dot_dimension_numbers<[2], [2], [1], [1], [0, 0, 0, 1, 1, 1], [0], [0]>} : vector<4x8x32xf32>, vector<4x8x32xf32>, vector<4x8x8xf32> -> vector<4x8x8xf32>
    "tpu.trace_stop"() : () -> ()
    %c0_9 = arith.constant 0 : index
    %c0_10 = arith.constant 0 : index
    %c0_11 = arith.constant 0 : index
    %6 = vector.load %arg6[%c0_9, %c0_10, %c0_11] : memref<4x8x8xi8, #tpu.memory_space<vmem>>, vector<4x8x8xi8>
    %c0_i8 = arith.constant 0 : i8
    %7 = vector.broadcast %c0_i8 : i8 to vector<4x8x8xi8>
    %8 = arith.cmpi ne, %6, %7 : vector<4x8x8xi8>
    %cst_12 = arith.constant 0xFF800000 : f32
    %9 = vector.broadcast %cst_12 : f32 to vector<4x8x8xf32>
    %10 = arith.select %8, %9, %5 : vector<4x8x8xi1>, vector<4x8x8xf32>
    %cst_13 = arith.constant dense<0xFF800000> : vector<4x8xf32>
    %11 = vector.multi_reduction <maximumf>, %10, %cst_13 [2] : vector<4x8x8xf32> to vector<4x8xf32>
    %12 = vector.shape_cast %11 : vector<4x8xf32> to vector<4x8x1xf32>
    %13 = vector.broadcast %12 : vector<4x8x1xf32> to vector<4x8x8xf32>
    %14 = arith.subf %10, %13 : vector<4x8x8xf32>
    %15 = math.exp %14 : vector<4x8x8xf32>
    %cst_14 = arith.constant dense<0.000000e+00> : vector<4x8xf32>
    %16 = vector.multi_reduction <add>, %15, %cst_14 [2] : vector<4x8x8xf32> to vector<4x8xf32>
    %17 = vector.shape_cast %16 : vector<4x8xf32> to vector<4x8x1xf32>
    %18 = tpu.reciprocal %17 {approx = true} : vector<4x8x1xf32> -> vector<4x8x1xf32>
    %19 = vector.broadcast %18 : vector<4x8x1xf32> to vector<4x8x8xf32>
    %20 = arith.mulf %15, %19 : vector<4x8x8xf32>
    %c0_15 = arith.constant 0 : index
    %c0_16 = arith.constant 0 : index
    %c0_17 = arith.constant 0 : index
    %21 = vector.load %arg7[%c0_15, %c0_16, %c0_17] : memref<4x8x8xf32, #tpu.memory_space<vmem>>, vector<4x8x8xf32>
    tpu.vector_store %arg7[%c0_15, %c0_16, %c0_17], %20 {strides = array<i32>} : memref<4x8x8xf32, #tpu.memory_space<vmem>>, vector<4x8x8xf32>,
    "tpu.trace_start"() <{level = 10 : i32, message = "bqk,bkd->bqd"}> : () -> ()
    %cst_18 = arith.constant dense<0.000000e+00> : vector<4x8x32xf32>
    %22 = tpu.matmul %20, %4, %cst_18 {dimension_numbers = #tpu.dot_dimension_numbers<[2], [1], [1], [2], [0, 0, 0, 1, 1, 2], [0], [0]>} : vector<4x8x8xf32>, vector<4x8x32xf32>, vector<4x8x32xf32> -> vector<4x8x32xf32>
    "tpu.trace_stop"() : () -> ()
    %c0_19 = arith.constant 0 : index
    %c0_20 = arith.constant 0 : index
    %c0_21 = arith.constant 0 : index
    %23 = vector.load %arg8[%c0_19, %c0_20, %c0_21] : memref<4x8x32xf32, #tpu.memory_space<vmem>>, vector<4x8x32xf32>
    tpu.vector_store %arg8[%c0_19, %c0_20, %c0_21], %22 {strides = array<i32>} : memref<4x8x32xf32, #tpu.memory_space<vmem>>, vector<4x8x32xf32>,
    return
  }
  func.func @transform_0(%arg0: i32, %arg1: i32, %arg2: i32) -> (i32, i32, i32) {
    %c0_i32 = arith.constant 0 : i32
    return %arg1, %arg2, %arg0 : i32, i32, i32
  }
  func.func @transform_1(%arg0: i32, %arg1: i32, %arg2: i32) -> (i32, i32, i32) {
    %c0_i32 = arith.constant 0 : i32
    %c0_i32_0 = arith.constant 0 : i32
    return %arg1, %c0_i32, %arg0 : i32, i32, i32
  }
  func.func @transform_2(%arg0: i32, %arg1: i32, %arg2: i32) -> (i32, i32, i32) {
    %c0_i32 = arith.constant 0 : i32
    %c0_i32_0 = arith.constant 0 : i32
    return %arg1, %c0_i32, %arg0 : i32, i32, i32
  }
  func.func @transform_3(%arg0: i32, %arg1: i32, %arg2: i32) -> (i32, i32, i32) {
    %c1_i32 = arith.constant 1 : i32
    %c0_i32 = arith.constant 0 : i32
    %0 = arith.cmpi eq, %c1_i32, %c0_i32 : i32
    %c1_i32_0 = arith.constant 1 : i32
    %1 = arith.select %0, %c1_i32_0, %c1_i32 : i32
    %2 = arith.remsi %arg1, %1 : i32
    %c0_i32_1 = arith.constant 0 : i32
    %3 = arith.cmpi ne, %2, %c0_i32_1 : i32
    %c0_i32_2 = arith.constant 0 : i32
    %4 = arith.cmpi slt, %2, %c0_i32_2 : i32
    %c0_i32_3 = arith.constant 0 : i32
    %5 = arith.cmpi slt, %1, %c0_i32_3 : i32
    %6 = arith.xori %4, %5 : i1
    %7 = arith.andi %6, %3 : i1
    %8 = arith.addi %2, %1 : i32
    %9 = arith.select %7, %8, %2 : i32
    %c0_i32_4 = arith.constant 0 : i32
    %c0_i32_5 = arith.constant 0 : i32
    return %9, %arg2, %c0_i32_4 : i32, i32, i32
  }
  func.func @transform_4(%arg0: i32, %arg1: i32, %arg2: i32) -> (i32, i32, i32) {
    %c1_i32 = arith.constant 1 : i32
    %0 = arith.muli %arg0, %c1_i32 : i32
    %1 = arith.addi %0, %arg1 : i32
    %c0_i32 = arith.constant 0 : i32
    %c0_i32_0 = arith.constant 0 : i32
    return %1, %arg2, %c0_i32 : i32, i32, i32
  }
  func.func @transform_5(%arg0: i32, %arg1: i32, %arg2: i32) -> (i32, i32, i32) {
    %c0_i32 = arith.constant 0 : i32
    return %arg1, %arg2, %arg0 : i32, i32, i32
  }
}

</mosaic_0001>

<bundles_post_ra>
// kernel: tpu_custom_call.1
= control target key start
LH: loop header
LB: loop body
LE: loop exit
PB: predicated region body
PF: predicated region fallthrough
CT: control target
= control target key end

     0   :  { %11 = vsyncpa [#allocation3], 0  ;;  %s1192_s0 = inlined_call_operand.hbm [shape: f32[4,8,32], index: 0, kind: input, shape index: {}]   ;;  %s1193_s1 = inlined_call_operand.hbm [shape: f32[4,8,32], index: 1, kind: input, shape index: {}]   ;;  %s1194_s2 = inlined_call_operand.hbm [shape: f32[4,8,32], index: 2, kind: input, shape index: {}]   ;;  %s1195_s3 = inlined_call_operand.vmem [shape: s8[4,8,8], index: 3, kind: input, shape index: {}]   ;;  %s1196_s4 = inlined_call_operand.hbm [shape: f32[4,8,8], index: 4, kind: output, shape index: {0}]   ;;  %s1197_s5 = inlined_call_operand.hbm [shape: f32[4,8,32], index: 5, kind: output, shape index: {1}]  }
   0x1   :  { %12 = vsyncpa [#allocation6], 0 }
   0x2   :  { %13 = vsyncpa [#allocation4], 0 }
   0x3   :  { %14 = vsyncpa [#allocation10], 0  ;;  %s1006_s18 = smov [#allocation5]   ;;  %s1007_s20 = smov [#allocation2]  }
   0x4   :  { %s32_s19 = sshll.u32 %s1006_s18, 4  ;;  %s20_s21 = sshll.u32 %s1007_s20, 4  ;;  %s33_s19 = int_to_ptr.vmem [resolvable:$true] %s32_s19  ;;  %s1046_s21 = int_to_ptr.vmem [resolvable:$true] %s20_s21 }
   0x5   :  { %s888_s24 = scalar_lea.hbm %s1193_s1, 512 }
   0x6   :  { %p889_p0 = scmp.ne.s32.totalorder %s1193_s1, %s888_s24  ;;  %p892_p1 = scmp.lt.u32.totalorder %s888_s24, %s1193_s1 }
   0x8   :  { %p894_p2 = pnand %p892_p1, %p889_p0 }
   0xa   :  { %897 = shalt.err (!%p894_p2)
}
   0xb   :  { %s898_s29 = scalar_lea.vmem %s33_s19, 512  ;;  %p903_p4 = scmp.lt.s32.totalorder %s33_s19, %s33_s19 }
   0xc   :  { %p899_p3 = scmp.ne.s32.totalorder %s33_s19, %s898_s29  ;;  %p904_p5 = scmp.lt.s32.totalorder %s898_s29, %s898_s29 }
   0xe   :  { %p905_p6 = por %p904_p5, %p903_p4 }
  0x10   :  { %p906_p7 = pnand %p905_p6, %p899_p3 }
  0x12   :  { %909 = shalt.err (!%p906_p7)
}
  0x13   :  { %s1008_s30 = smov 128   ;;  %s1009_s6 = smov 8  }
  0x14   :  { %38 = dma.hbm_to_vmem [thread:$0]  %s1193_s1, 512, %s33_s19, [#allocation6], %s1008_s30, %s1008_s30, %s1009_s6  }
  0x15   :  { %s910_s11 = scalar_lea.hbm %s1192_s0, 512 }
  0x16   :  { %p911_p8 = scmp.ne.s32.totalorder %s1192_s0, %s910_s11  ;;  %p914_p9 = scmp.lt.u32.totalorder %s910_s11, %s1192_s0 }
  0x18   :  { %p916_p10 = pnand %p914_p9, %p911_p8 }
  0x1a   :  { %919 = shalt.err (!%p916_p10)
}
  0x1b   :  { %s920_s16 = scalar_lea.vmem %s1046_s21, 512  ;;  %p925_p12 = scmp.lt.s32.totalorder %s1046_s21, %s1046_s21 }
  0x1c   :  { %p921_p11 = scmp.ne.s32.totalorder %s1046_s21, %s920_s16  ;;  %p926_p13 = scmp.lt.s32.totalorder %s920_s16, %s920_s16 }
  0x1e   :  { %p927_p0 = por %p926_p13, %p925_p12 }
  0x20   :  { %p928_p1 = pnand %p927_p0, %p921_p11 }
  0x22   :  { %931 = shalt.err (!%p928_p1)
}
  0x23   :  { %26 = dma.hbm_to_vmem [thread:$0]  %s1192_s0, 512, %s1046_s21, [#allocation3], %s1008_s30, %s1008_s30, %s1009_s6  }
  0x24   :  { %s1010_s18 = smov [#allocation7]   ;;  %s932_s23 = scalar_lea.hbm %s1194_s2, 512 }
  0x25   :  { %s44_s19 = sshll.u32 %s1010_s18, 4  ;;  %p933_p2 = scmp.ne.s32.totalorder %s1194_s2, %s932_s23  ;;  %s45_s19 = int_to_ptr.vmem [resolvable:$true] %s44_s19 }
  0x26   :  { %p936_p3 = scmp.lt.u32.totalorder %s932_s23, %s1194_s2 }
  0x28   :  { %p938_p4 = pnand %p936_p3, %p933_p2 }
  0x2a   :  { %941 = shalt.err (!%p938_p4)
}
  0x2b   :  { %s942_s28 = scalar_lea.vmem %s45_s19, 512  ;;  %p947_p6 = scmp.lt.s32.totalorder %s45_s19, %s45_s19 }
  0x2c   :  { %p943_p5 = scmp.ne.s32.totalorder %s45_s19, %s942_s28  ;;  %p948_p7 = scmp.lt.s32.totalorder %s942_s28, %s942_s28 }
  0x2e   :  { %p949_p8 = por %p948_p7, %p947_p6 }
  0x30   :  { %p950_p9 = pnand %p949_p8, %p943_p5 }
  0x32   :  { %953 = shalt.err (!%p950_p9)
}
  0x33   :  { %50 = dma.hbm_to_vmem [thread:$0]  %s1194_s2, 512, %s45_s19, [#allocation6], %s1008_s30, %s1008_s30, %s1009_s6  }
  0x34   :  { %998 = dma.done.wait [#allocation3], 512  }
  0x35   :  { %999 = vsyncadd [#allocation3], 4294966784 }
  0x36   :  { %1000 = dma.done.wait [#allocation6], 1024  }
  0x37   :  { %1001 = vsyncadd [#allocation6], 4294966272  ;;  %v1011_v0 = vmov 0.0   ;;  %vm1012_vm0 = vmmov 0   ;;  %vm82_vm1 = vcmask 261120   ;;  %v74_v1 = vld [vmem:[#allocation5] sm:$0xff] }
  0x38   :  { %822 = vmatprep.subr.mxu0 %v1011_v0  ;;  %824 = vmatprep.mubr.msk.f32.mxu0 %vm1012_vm0, %v1011_v0  ;;  %v66_v2 = vld [vmem:[#allocation2] sm:$0xff]  ;;  %v75_v3 = vld [vmem:[#allocation5 + $0x8] sm:$0xff]  ;;  %v68_v6 = vld [vmem:[#allocation2 + $0x10] sm:$0xff]  ;;  %v1013_v17 = vmov 0   ;;  %vm411_vm8 = vcmask 64512  }
  0x39   :  { %827 = vmatprep.subr.mxu1 %v1011_v0  ;;  %829 = vmatprep.mubr.msk.f32.mxu1 %vm1012_vm0, %v1011_v0  ;;  %v70_v4 = vmul.f32 1.767767e+13, %v66_v2  ;;  %v67_v5 = vld [vmem:[#allocation2 + $0x8] sm:$0xff]  ;;  %v76_v7 = vld [vmem:[#allocation5 + $0x10] sm:$0xff]  ;;  %v69_v9 = vld [vmem:[#allocation2 + $0x18] sm:$0xff] }
  0x3a   :  { %823 = vmatpush3.xpose.msk.msra.mxu0 %vm82_vm1, %v74_v1  ;;  %828 = vmatpush3.xpose.msk.msra.mxu1 %vm82_vm1, %v75_v3  ;;  %v71_v8 = vmul.f32 1.767767e+13, %v67_v5  ;;  %v77_v10 = vld [vmem:[#allocation5 + $0x18] sm:$0xff]  ;;  %v72_v11 = vmul.f32 1.767767e+13, %v68_v6  ;;  %v78_v62 = vld [vmem:[#allocation7] sm:$0xff] }
  0x3b   :  { %832 = vmatprep.subr.mxu0 %v1011_v0  ;;  %837 = vmatprep.subr.mxu1 %v1011_v0  ;;  %v73_v12 = vmul.f32 1.767767e+13, %v69_v9  ;;  %v387_v13 = vld [vmem:[%s1195_s3] sm:$0x3]  ;;  %v388_v14 = vld [vmem:[%s1195_s3 + $0x2] sm:$0x3] }
  0x3c   :  { %vm391_vm2 = vnez %v387_v13  ;;  %vm392_vm3 = vnez %v388_v14  ;;  %v389_v15 = vld [vmem:[%s1195_s3 + $0x4] sm:$0x3]  ;;  %v390_v16 = vld [vmem:[%s1195_s3 + $0x6] sm:$0x3]  ;;  %v79_v63 = vld [vmem:[#allocation7 + $0x8] sm:$0xff]  ;;  %s1014_s3 = smov [#allocation8]  }
  0x3d   :  { %825 = vmatmul.mubr.msk.f32.vlgmr.msra.gmra.mrb[0].mxu0 %vm82_vm1, %v70_v4  ;;  %830 = vmatmul.mubr.msk.f32.vlgmr.msra.gmra.mrb[0].mxu1 %vm82_vm1, %v71_v8  ;;  %v395_v18 = vsel %vm391_vm2, 16843009, %v1013_v17  ;;  %v396_v19 = vsel %vm392_vm3, 16843009, %v1013_v17  ;;  %vm393_vm4 = vnez %v389_v15  ;;  %vm394_vm5 = vnez %v390_v16  ;;  %s765_s13 = sshll.u32 %s1014_s3, 4  ;;  %s766_s13 = int_to_ptr.vmem [resolvable:$true] %s765_s13 }
  0x3e   :  { %833 = vmatpush3.xpose.msk.msra.mxu0 %vm82_vm1, %v76_v7  ;;  %834 = vmatprep.mubr.msk.f32.mxu0 %vm1012_vm0, %v1011_v0  ;;  %v399_v20 = vunpack.c.0.s8 %v395_v18  ;;  %v400_v21 = vunpack.c.0.s8 %v396_v19  ;;  %v397_v22 = vsel %vm393_vm4, 16843009, %v1013_v17  ;;  %v398_v23 = vsel %vm394_vm5, 16843009, %v1013_v17  ;;  %v80_v7 = vld [vmem:[#allocation7 + $0x10] sm:$0xff]  ;;  %s954_s14 = scalar_lea.vmem %s766_s13, 512  ;;  %p959_p11 = scmp.lt.s32.totalorder %s766_s13, %s766_s13 }
  0x3f   :  { %838 = vmatpush3.xpose.msk.msra.mxu1 %vm82_vm1, %v77_v10  ;;  %839 = vmatprep.mubr.msk.f32.mxu1 %vm1012_vm0, %v1011_v0  ;;  %v401_v24 = vunpack.c.0.s8 %v397_v22  ;;  %v402_v25 = vunpack.c.0.s8 %v398_v23  ;;  %p955_p10 = scmp.ne.s32.totalorder %s766_s13, %s954_s14  ;;  %p960_p12 = scmp.lt.s32.totalorder %s954_s14, %s954_s14 }
  0x40   :  { %842 = vmatprep.subr.mxu0 %v1011_v0  ;;  %847 = vmatprep.subr.mxu1 %v1011_v0  ;;  %vm403_vm6 = vcmp.ne.s32.totalorder %v399_v20, 0  ;;  %vm404_vm7 = vcmp.ne.s32.totalorder %v400_v21, 0 }
  0x41   :  { %835 = vmatmul.mubr.msk.f32.vlgmr.msra.gmra.mrb[2].mxu0 %vm82_vm1, %v72_v11  ;;  %vm405_vm9 = vcmp.ne.s32.totalorder %v401_v24, 0  ;;  %vm406_vm10 = vcmp.ne.s32.totalorder %v402_v25, 0  ;;  %v81_v11 = vld [vmem:[#allocation7 + $0x18] sm:$0xff]  ;;  %p961_p13 = por %p960_p12, %p959_p11 }
  0x42   :  { %840 = vmatmul.mubr.msk.f32.vlgmr.msra.gmra.mrb[2].mxu1 %vm82_vm1, %v73_v12  ;;  %844 = vmatprep.mubr.msk.f32.mxu0 %vm1012_vm0, %v1011_v0 }
  0x43   :  { %849 = vmatprep.mubr.msk.f32.mxu1 %vm1012_vm0, %v1011_v0  ;;  %843 = vmatpush3.msra.mxu0 %v78_v62  ;;  %p962_p0 = pnand %p961_p13, %p955_p10 }
  0x44   :  { %852 = vmatprep.subr.mxu0 %v1011_v0  ;;  %848 = vmatpush3.msra.mxu1 %v79_v63 }
  0x45   :  { %857 = vmatprep.subr.mxu1 %v1011_v0 }
 0x110   :  { %v155_v26 = vpop.f32.mrb[0].mxu0  ;;  %v231_v27 = vpop.f32.mrb[0].mxu1 }
 0x111   :  { %v407_v28 = vsel %vm403_vm6, -inf, %v155_v26  ;;  %v826_v29 = vpop.f32.mrb[1].mxu0  ;;  %v408_v30 = vsel %vm404_vm7, -inf, %v231_v27  ;;  %v831_v31 = vpop.f32.mrb[1].mxu1 }
 0x112   :  { %v412_v32 = vsel %vm411_vm8, %v407_v28, -inf  ;;  %v415_v34 = vsel %vm411_vm8, %v408_v30, -inf }
 0x113   :  { %413 = vmax.xlane.f32.xlu0 %v412_v32 }
 0x114   :  { %v307_v33 = vpop.f32.mrb[2].mxu0 }
 0x115   :  { %v409_v35 = vsel %vm405_vm9, -inf, %v307_v33  ;;  %v836_v36 = vpop.f32.mrb[3].mxu0  ;;  %v383_v37 = vpop.f32.mrb[2].mxu1 }
 0x116   :  { %v418_v38 = vsel %vm411_vm8, %v409_v35, -inf  ;;  %v410_v39 = vsel %vm406_vm10, -inf, %v383_v37  ;;  %v841_v40 = vpop.f32.mrb[3].mxu1 }
 0x117   :  { %416 = vmax.xlane.f32.xlu0 %v415_v34  ;;  %419 = vmax.xlane.f32.xlu1 %v418_v38  ;;  %v421_v41 = vsel %vm411_vm8, %v410_v39, -inf }
 0x11b   :  { %422 = vmax.xlane.f32.xlu1 %v421_v41 }
 0x1a0   :  { %v414_v42 = vpop.xlane.xlu0 %413 }
 0x1a1   :  { %v424_v43 = vsub.f32 %v407_v28, %v414_v42 }
 0x1a3   :  { %v428_v44 = vmul.f32 1.442695, %v424_v43 }
 0x1a4   :  { %v417_v45 = vpop.xlane.xlu0 %416  ;;  %v420_v46 = vpop.xlane.xlu1 %419 }
 0x1a5   :  { %872 = vpow2.f32 %v428_v44  ;;  %v425_v47 = vsub.f32 %v408_v30, %v417_v45  ;;  %v426_v48 = vsub.f32 %v409_v35, %v420_v46 }
 0x1a7   :  { %v430_v49 = vmul.f32 1.442695, %v425_v47  ;;  %v432_v50 = vmul.f32 1.442695, %v426_v48 }
 0x1a8   :  { %v423_v51 = vpop.xlane.xlu1 %422 }
 0x1a9   :  { %874 = vpow2.f32 %v430_v49  ;;  %v427_v52 = vsub.f32 %v410_v39, %v423_v51 }
 0x1aa   :  { %876 = vpow2.f32 %v432_v50 }
 0x1ab   :  { %v434_v53 = vmul.f32 1.442695, %v427_v52 }
 0x1ad   :  { %878 = vpow2.f32 %v434_v53 }
 0x1af   :  { %v873_v54 = vpop.eup %872 }
 0x1b0   :  { %v436_v55 = vsel %vm411_vm8, %v873_v54, 0.0 }
 0x1b1   :  { %437 = vadd.xlane.f32.xlu0 %v436_v55 }
 0x1b3   :  { %v875_v56 = vpop.eup %874 }
 0x1b4   :  { %v877_v57 = vpop.eup %876  ;;  %v439_v58 = vsel %vm411_vm8, %v875_v56, 0.0 }
 0x1b5   :  { %440 = vadd.xlane.f32.xlu1 %v439_v58  ;;  %v442_v59 = vsel %vm411_vm8, %v877_v57, 0.0 }
 0x1b6   :  { %443 = vadd.xlane.f32.xlu0 %v442_v59 }
 0x1b7   :  { %v879_v60 = vpop.eup %878 }
 0x1b8   :  { %v445_v61 = vsel %vm411_vm8, %v879_v60, 0.0 }
 0x1b9   :  { %446 = vadd.xlane.f32.xlu1 %v445_v61 }
 0x23e   :  { %v438_v1 = vpop.xlane.xlu0 %437 }
 0x23f   :  { %880 = vrcp.f32 %v438_v1 }
 0x242   :  { %v441_v2 = vpop.xlane.xlu1 %440 }
 0x243   :  { %v444_v3 = vpop.xlane.xlu0 %443  ;;  %882 = vrcp.f32 %v441_v2 }
 0x244   :  { %884 = vrcp.f32 %v444_v3 }
 0x246   :  { %v447_v4 = vpop.xlane.xlu1 %446 }
 0x247   :  { %886 = vrcp.f32 %v447_v4 }
 0x249   :  { %v881_v5 = vpop.eup %880 }
 0x24a   :  { %v452_v6 = vmul.f32 %v881_v5, %v873_v54 }
 0x24c   :  { %456 = vst.msk [vmem:[#allocation8] sm:$0xff] %vm411_vm8, %v452_v6  ;;  %845 = vmatmul.mubr.msk.f32.vlgmr.msra.gmra.mrb[4].mxu0 %vm411_vm8, %v452_v6 }
 0x24d   :  { %v883_v8 = vpop.eup %882  ;;  %853 = vmatpush3.msra.mxu0 %v80_v7  ;;  %854 = vmatprep.mubr.msk.f32.mxu0 %vm1012_vm0, %v1011_v0 }
 0x24e   :  { %v885_v9 = vpop.eup %884  ;;  %v453_v10 = vmul.f32 %v883_v8, %v875_v56 }
 0x24f   :  { %v454_v12 = vmul.f32 %v885_v9, %v877_v57 }
 0x250   :  { %457 = vst.msk [vmem:[#allocation8 + $0x8] sm:$0xff] %vm411_vm8, %v453_v10  ;;  %850 = vmatmul.mubr.msk.f32.vlgmr.msra.gmra.mrb[4].mxu1 %vm411_vm8, %v453_v10 }
 0x251   :  { %v887_v13 = vpop.eup %886  ;;  %458 = vst.msk [vmem:[#allocation8 + $0x10] sm:$0xff] %vm411_vm8, %v454_v12  ;;  %855 = vmatmul.mubr.msk.f32.vlgmr.msra.gmra.mrb[6].mxu0 %vm411_vm8, %v454_v12  ;;  %858 = vmatpush3.msra.mxu1 %v81_v11 }
 0x252   :  { %v455_v14 = vmul.f32 %v887_v13, %v879_v60  ;;  %859 = vmatprep.mubr.msk.f32.mxu1 %vm1012_vm0, %v1011_v0 }
 0x254   :  { %459 = vst.msk [vmem:[#allocation8 + $0x18] sm:$0xff] %vm411_vm8, %v455_v14  ;;  %860 = vmatmul.mubr.msk.f32.vlgmr.msra.gmra.mrb[6].mxu1 %vm411_vm8, %v455_v14 }
 0x255   :  { %965 = shalt.err (!%p962_p0)
}
 0x256   :  { %s966_s1 = scalar_lea.hbm %s1196_s4, 512 }
 0x257   :  { %p967_p1 = scmp.ne.s32.totalorder %s1196_s4, %s966_s1  ;;  %p970_p2 = scmp.lt.u32.totalorder %s966_s1, %s1196_s4 }
 0x259   :  { %p972_p3 = pnand %p970_p2, %p967_p1 }
 0x25b   :  { %975 = shalt.err (!%p972_p3)
}
 0x25c   :  { %771 = dma.vmem_to_hbm [thread:$0]  %s766_s13, 512, %s1196_s4, [#allocation4], %s1008_s30, %s1008_s30, %s1009_s6  }
 0x25d   :  { %s1015_s24 = smov [#allocation9]  }
 0x25e   :  { %s777_s25 = sshll.u32 %s1015_s24, 4  ;;  %s778_s25 = int_to_ptr.vmem [resolvable:$true] %s777_s25 }
 0x25f   :  { %s976_s4 = scalar_lea.vmem %s778_s25, 512  ;;  %p981_p5 = scmp.lt.s32.totalorder %s778_s25, %s778_s25 }
 0x260   :  { %p977_p4 = scmp.ne.s32.totalorder %s778_s25, %s976_s4  ;;  %p982_p6 = scmp.lt.s32.totalorder %s976_s4, %s976_s4 }
 0x262   :  { %p983_p7 = por %p982_p6, %p981_p5 }
 0x264   :  { %p984_p8 = pnand %p983_p7, %p977_p4 }
 0x31f   :  { %v529_v0 = vpop.f32.mrb[4].mxu0 }
 0x320   :  { %752 = vst.msk [vmem:[#allocation9] sm:$0xff] %vm82_vm1, %v529_v0  ;;  %v846_v15 = vpop.f32.mrb[5].mxu0 }
 0x323   :  { %v602_v16 = vpop.f32.mrb[4].mxu1 }
 0x324   :  { %753 = vst.msk [vmem:[#allocation9 + $0x8] sm:$0xff] %vm82_vm1, %v602_v16  ;;  %v675_v17 = vpop.f32.mrb[6].mxu0  ;;  %v851_v18 = vpop.f32.mrb[5].mxu1 }
 0x325   :  { %754 = vst.msk [vmem:[#allocation9 + $0x10] sm:$0xff] %vm82_vm1, %v675_v17  ;;  %v856_v19 = vpop.f32.mrb[7].mxu0 }
 0x327   :  { %v748_v20 = vpop.f32.mrb[6].mxu1 }
 0x328   :  { %755 = vst.msk [vmem:[#allocation9 + $0x18] sm:$0xff] %vm82_vm1, %v748_v20  ;;  %v861_v21 = vpop.f32.mrb[7].mxu1 }
 0x329   :  { %987 = shalt.err (!%p984_p8)
}
 0x32a   :  { %s988_s28 = scalar_lea.hbm %s1197_s5, 512 }
 0x32b   :  { %p989_p9 = scmp.ne.s32.totalorder %s1197_s5, %s988_s28  ;;  %p992_p10 = scmp.lt.u32.totalorder %s988_s28, %s1197_s5 }
 0x32d   :  { %p994_p11 = pnand %p992_p10, %p989_p9 }
 0x32f   :  { %997 = shalt.err (!%p994_p11)
}
 0x330   :  { %783 = dma.vmem_to_hbm [thread:$0]  %s778_s25, 512, %s1197_s5, [#allocation10], %s1008_s30, %s1008_s30, %s1009_s6  }
 0x331   :  { %1002 = dma.done.wait [#allocation4], 512  }
 0x332   :  { %1003 = vsyncadd [#allocation4], 4294966784 }
 0x333   :  { %1004 = dma.done.wait [#allocation10], 512  }
 0x334   :  { %1005 = vsyncadd [#allocation10], 4294966784 }
 0x335   :  { %790 = vsyncpa [#allocation3], 1 }
 0x336   :  { %791 = vsyncpa [#allocation6], 1 }
 0x337   :  { %792 = vsyncpa [#allocation4], 1 }
 0x338   :  { %793 = vsyncpa [#allocation10], 1 }

</bundles_post_ra>
